<compile_context>
chip_gen: v7x
topology: tpu7x:2x2x1
jax: 0.10.0
libtpu: 0.0.40
codegen_flags: <defaults>
</compile_context>

<pallas_src>
import math

import jax
import jax.numpy as jnp
from jax.experimental import pallas as pl
from jax.experimental.pallas import tpu as pltpu


def _round_up(v, m):
    return (v + m - 1) // m * m


def sae_kernel(x_ref, w_enc_ref, b_enc_ref, w_dec_ref, b_dec_ref,
               z_ref, xp_ref, xc_ref, acc_ref):
    """Grid = (batch_tiles, hidden_tiles)."""
    h = pl.program_id(1)

    # Once per batch tile: center x, cache it in bf16 for both MXU passes,
    # and zero the xprime accumulator.
    @pl.when(h == 0)
    def _():
        xc = x_ref[...].astype(jnp.float32) - b_dec_ref[...]
        xc_ref[...] = xc.astype(xc_ref.dtype)
        acc_ref[...] = jnp.zeros_like(acc_ref)

    xc = xc_ref[...]                                            # (tb, D) bf16

    # Encoder for this hidden tile: (tb, D) @ (D, th) on the MXU, f32 acc.
    pre = jnp.dot(xc, w_enc_ref[...],
                  preferred_element_type=jnp.float32) + b_enc_ref[...]
    z = jnp.maximum(pre, 0.0)
    z_ref[...] = z.astype(z_ref.dtype)

    # Decoder partial sum for this hidden tile: (tb, th) @ (th, D), f32 acc.
    acc_ref[...] += jnp.dot(z.astype(w_dec_ref.dtype), w_dec_ref[...],
                            preferred_element_type=jnp.float32)

    # Last hidden tile: add decoder bias and write xprime.
    @pl.when(h == pl.num_programs(1) - 1)
    def _():
        xp_ref[...] = (acc_ref[...] + b_dec_ref[...]).astype(xp_ref.dtype)


def sae_forward(x, w_enc_t, b_enc, w_dec_t, b_dec, *, tb=256, th=512):
    """x: (B, input_dim); w_enc_t: (input_dim, hidden); w_dec_t: (hidden, input_dim)."""
    B, D = x.shape
    H = w_enc_t.shape[1]
    assert w_enc_t.shape == (D, H) and w_dec_t.shape == (H, D)
    assert b_enc.shape == (H,) and b_dec.shape == (D,)

    # Tile sizes: batch tile multiple of 8 sublanes, hidden tile multiple of
    # 128 lanes (lane-dense stores, full MXU columns).
    tb = int(min(tb, _round_up(B, 8)))
    th = int(min(th, _round_up(H, 128)))
    Bp = _round_up(B, tb)
    Hp = _round_up(H, th)

    # Zero-pad batch / hidden so tiles divide evenly (exact after slicing).
    x_p = x if Bp == B else jnp.pad(x, ((0, Bp - B), (0, 0)))
    w_enc_p = w_enc_t if Hp == H else jnp.pad(w_enc_t, ((0, 0), (0, Hp - H)))
    w_dec_p = w_dec_t if Hp == H else jnp.pad(w_dec_t, ((0, Hp - H), (0, 0)))
    b_enc_p = b_enc if Hp == H else jnp.pad(b_enc, (0, Hp - H))

    # bf16 weights on the MXU; f32 biases; f32 accumulation inside the kernel.
    w_enc_bf = w_enc_p.astype(jnp.bfloat16)
    w_dec_bf = w_dec_p.astype(jnp.bfloat16)
    b_enc2 = b_enc_p.reshape(1, Hp).astype(jnp.float32)
    b_dec2 = b_dec.reshape(1, D).astype(jnp.float32)

    grid = (Bp // tb, Hp // th)
    out_itemsize = jnp.dtype(x.dtype).itemsize

    # Explicit VMEM budget (double-buffered tiles + scratch) with headroom,
    # clamped to v7x's 64 MiB physical VMEM.
    vmem_bytes = (
        2 * tb * D * 4                       # x tile
        + 2 * D * th * 2                     # W_enc_t tile (bf16)
        + 2 * th * 4                         # b_enc tile
        + 2 * th * D * 2                     # W_dec_t tile (bf16)
        + 2 * D * 4                          # b_dec
        + 2 * tb * th * out_itemsize         # z tile
        + 2 * tb * D * out_itemsize          # xprime tile
        + tb * D * 2                         # xc scratch (bf16)
        + tb * D * 4                         # accumulator scratch (f32)
    )
    vmem_limit = min(int(vmem_bytes * 2) + (2 << 20), 64 * 1024 * 1024)

    cost = pl.CostEstimate(
        flops=2 * 2 * Bp * D * Hp,
        transcendentals=0,
        bytes_accessed=(x_p.size * 4 + w_enc_bf.size * 2 + w_dec_bf.size * 2
                        + Bp * Hp * out_itemsize + Bp * D * out_itemsize),
    )

    z_full, xp_full = pl.pallas_call(
        sae_kernel,
        out_shape=(
            jax.ShapeDtypeStruct((Bp, Hp), x.dtype),
            jax.ShapeDtypeStruct((Bp, D), x.dtype),
        ),
        grid_spec=pltpu.PrefetchScalarGridSpec(
            num_scalar_prefetch=0,
            grid=grid,
            in_specs=[
                pl.BlockSpec((tb, D), lambda i, h: (i, 0)),    # x tile (constant over h)
                pl.BlockSpec((D, th), lambda i, h: (0, h)),    # W_enc_t column tile
                pl.BlockSpec((1, th), lambda i, h: (0, h)),    # b_enc tile
                pl.BlockSpec((th, D), lambda i, h: (h, 0)),    # W_dec_t row tile
                pl.BlockSpec((1, D), lambda i, h: (0, 0)),     # b_dec
            ],
            out_specs=[
                pl.BlockSpec((tb, th), lambda i, h: (i, h)),   # z
                pl.BlockSpec((tb, D), lambda i, h: (i, 0)),    # xprime (resident over h)
            ],
            scratch_shapes=[
                pltpu.VMEM((tb, D), jnp.bfloat16),             # xc cache
                pltpu.VMEM((tb, D), jnp.float32),              # xprime accumulator
            ],
        ),
        compiler_params=pltpu.CompilerParams(
            dimension_semantics=("parallel", "arbitrary"),
            vmem_limit_bytes=vmem_limit,
        ),
        cost_estimate=cost,
    )(x_p, w_enc_bf, b_enc2, w_dec_bf, b_dec2)

    z = z_full[:B, :H]
    xprime = xp_full[:B, :]
    return x, z, xprime


def kaiming_uniform(key, shape, fan_in, a=math.sqrt(5)):
    # PyTorch nn.init.kaiming_uniform_ with a=sqrt(5): bound = 1 / sqrt(fan_in)
    bound = math.sqrt(6.0 / ((1.0 + a * a) * fan_in))
    return jax.random.uniform(key, shape, jnp.float32, -bound, bound)


if __name__ == "__main__":
    # Small shapes that still exercise batch padding, hidden tiling and the
    # accumulator path: grid = (2 batch tiles, 2 hidden tiles) with padding.
    input_dim, hidden_dim, batch = 256, 384, 48

    key = jax.random.PRNGKey(0)
    k_x, k_enc, k_dec, k_bd = jax.random.split(key, 4)

    # PyTorch parameter shapes: W_enc.weight (hidden, input), W_dec.weight (input, hidden)
    W_enc_weight = kaiming_uniform(k_enc, (hidden_dim, input_dim), fan_in=input_dim)
    W_dec_weight = kaiming_uniform(k_dec, (input_dim, hidden_dim), fan_in=hidden_dim)
    b_enc = jnp.zeros((hidden_dim,), jnp.float32)
    b_dec = jax.random.normal(k_bd, (input_dim,), jnp.float32) * 0.1  # b_dec_init

    x = jax.random.normal(k_x, (batch, input_dim), jnp.float32)

    # Pre-transpose for row-major kernel matmuls (nn.Linear computes x @ W.T).
    W_enc_t = W_enc_weight.T   # (input_dim, hidden_dim)
    W_dec_t = W_dec_weight.T   # (hidden_dim, input_dim)

    x_out, z, xprime = jax.block_until_ready(
        sae_forward(x, W_enc_t, b_enc, W_dec_t, b_dec, tb=32, th=256))

    # bf16-consistent pure-JAX reference (kernel runs MXU matmuls in bf16 with
    # f32 accumulation).
    xc = (x - b_dec).astype(jnp.bfloat16)
    z_ref = jnp.maximum(
        jnp.dot(xc, W_enc_t.astype(jnp.bfloat16),
                preferred_element_type=jnp.float32) + b_enc, 0.0)
    xp_ref = jnp.dot(z_ref.astype(jnp.bfloat16), W_dec_t.astype(jnp.bfloat16),
                     preferred_element_type=jnp.float32) + b_dec

    assert z.shape == (batch, hidden_dim) and xprime.shape == (batch, input_dim)
    assert jnp.allclose(z, z_ref, atol=1e-2, rtol=1e-2)
    assert jnp.allclose(xprime, xp_ref, atol=1e-2, rtol=1e-2)
    assert jnp.array_equal(x_out, x)

    # TODO(synk): normalizeWdec() and loss() are training-time utilities, not
    # part of the forward pass, and are intentionally not implemented here.
    print("KERNEL_OK")
</pallas_src>

<mosaic_0001>
module attributes {stable_mosaic.version = 11 : i64} {
  func.func @sae_kernel(%arg0: i32, %arg1: i32, %arg2: memref<32x256xf32, #tpu.memory_space<vmem>>, %arg3: memref<256x256xbf16, #tpu.memory_space<vmem>>, %arg4: memref<1x256xf32, #tpu.memory_space<vmem>>, %arg5: memref<256x256xbf16, #tpu.memory_space<vmem>>, %arg6: memref<1x256xf32, #tpu.memory_space<vmem>>, %arg7: memref<32x256xf32, #tpu.memory_space<vmem>>, %arg8: memref<32x256xf32, #tpu.memory_space<vmem>>, %arg9: memref<32x256xbf16, #tpu.memory_space<vmem>>, %arg10: memref<32x256xf32, #tpu.memory_space<vmem>>) attributes {dimension_semantics = [#tpu.dimension_semantics<parallel>, #tpu.dimension_semantics<arbitrary>], iteration_bounds = array<i64: 2, 2>, scalar_prefetch = 0 : i64, scratch_operands = 2 : i64, tpu.core_type = #tpu.core_type<tc>, window_params = [{transform_indices = @transform_0, window_bounds = array<i64: 32, 256>}, {transform_indices = @transform_1, window_bounds = array<i64: 256, 256>}, {transform_indices = @transform_2, window_bounds = array<i64: 1, 256>}, {transform_indices = @transform_3, window_bounds = array<i64: 256, 256>}, {pipeline_mode = #tpu.pipeline_mode<synchronous>, transform_indices = @transform_4, window_bounds = array<i64: 1, 256>}, {transform_indices = @transform_5, window_bounds = array<i64: 32, 256>}, {transform_indices = @transform_6, window_bounds = array<i64: 32, 256>}]} {
    %c0_i32 = arith.constant 0 : i32
    %0 = arith.cmpi eq, %arg1, %c0_i32 : i32
    %1 = arith.extui %0 : i1 to i32
    %c0_i32_0 = arith.constant 0 : i32
    %2 = arith.cmpi ne, %1, %c0_i32_0 : i32
    scf.if %2 {
      %c0_17 = arith.constant 0 : index
      %c0_18 = arith.constant 0 : index
      %21 = vector.load %arg2[%c0_17, %c0_18] : memref<32x256xf32, #tpu.memory_space<vmem>>, vector<32x256xf32>
      %c0_19 = arith.constant 0 : index
      %c0_20 = arith.constant 0 : index
      %22 = vector.load %arg6[%c0_19, %c0_20] : memref<1x256xf32, #tpu.memory_space<vmem>>, vector<1x256xf32>
      %23 = vector.broadcast %22 : vector<1x256xf32> to vector<32x256xf32>
      %24 = arith.subf %21, %23 : vector<32x256xf32>
      %25 = arith.truncf %24 : vector<32x256xf32> to vector<32x256xbf16>
      %c0_21 = arith.constant 0 : index
      %c0_22 = arith.constant 0 : index
      %26 = vector.load %arg9[%c0_21, %c0_22] : memref<32x256xbf16, #tpu.memory_space<vmem>>, vector<32x256xbf16>
      tpu.vector_store %arg9[%c0_21, %c0_22], %25 {strides = array<i32>} : memref<32x256xbf16, #tpu.memory_space<vmem>>, vector<32x256xbf16>,
      %cst_23 = arith.constant 0.000000e+00 : f32
      %27 = vector.broadcast %cst_23 : f32 to vector<32x256xf32>
      %c0_24 = arith.constant 0 : index
      %c0_25 = arith.constant 0 : index
      %28 = vector.load %arg10[%c0_24, %c0_25] : memref<32x256xf32, #tpu.memory_space<vmem>>, vector<32x256xf32>
      tpu.vector_store %arg10[%c0_24, %c0_25], %27 {strides = array<i32>} : memref<32x256xf32, #tpu.memory_space<vmem>>, vector<32x256xf32>,
    } else {
    }
    %c0 = arith.constant 0 : index
    %c0_1 = arith.constant 0 : index
    %3 = vector.load %arg9[%c0, %c0_1] : memref<32x256xbf16, #tpu.memory_space<vmem>>, vector<32x256xbf16>
    %c0_2 = arith.constant 0 : index
    %c0_3 = arith.constant 0 : index
    %4 = vector.load %arg3[%c0_2, %c0_3] : memref<256x256xbf16, #tpu.memory_space<vmem>>, vector<256x256xbf16>
    %cst = arith.constant dense<0.000000e+00> : vector<32x256xf32>
    %5 = tpu.matmul %3, %4, %cst {dimension_numbers = #tpu.dot_dimension_numbers<[1], [0], [0], [1], [0, 0, 1, 1], [], []>} : vector<32x256xbf16>, vector<256x256xbf16>, vector<32x256xf32> -> vector<32x256xf32>
    %c0_4 = arith.constant 0 : index
    %c0_5 = arith.constant 0 : index
    %6 = vector.load %arg4[%c0_4, %c0_5] : memref<1x256xf32, #tpu.memory_space<vmem>>, vector<1x256xf32>
    %7 = vector.broadcast %6 : vector<1x256xf32> to vector<32x256xf32>
    %8 = arith.addf %5, %7 : vector<32x256xf32>
    %cst_6 = arith.constant 0.000000e+00 : f32
    %9 = vector.broadcast %cst_6 : f32 to vector<32x256xf32>
    %10 = arith.maximumf %8, %9 : vector<32x256xf32>
    %c0_7 = arith.constant 0 : index
    %c0_8 = arith.constant 0 : index
    %11 = vector.load %arg7[%c0_7, %c0_8] : memref<32x256xf32, #tpu.memory_space<vmem>>, vector<32x256xf32>
    tpu.vector_store %arg7[%c0_7, %c0_8], %10 {strides = array<i32>} : memref<32x256xf32, #tpu.memory_space<vmem>>, vector<32x256xf32>,
    %c0_9 = arith.constant 0 : index
    %c0_10 = arith.constant 0 : index
    %12 = vector.load %arg10[%c0_9, %c0_10] : memref<32x256xf32, #tpu.memory_space<vmem>>, vector<32x256xf32>
    %13 = arith.truncf %10 : vector<32x256xf32> to vector<32x256xbf16>
    %c0_11 = arith.constant 0 : index
    %c0_12 = arith.constant 0 : index
    %14 = vector.load %arg5[%c0_11, %c0_12] : memref<256x256xbf16, #tpu.memory_space<vmem>>, vector<256x256xbf16>
    %cst_13 = arith.constant dense<0.000000e+00> : vector<32x256xf32>
    %15 = tpu.matmul %13, %14, %cst_13 {dimension_numbers = #tpu.dot_dimension_numbers<[1], [0], [0], [1], [0, 0, 1, 1], [], []>} : vector<32x256xbf16>, vector<256x256xbf16>, vector<32x256xf32> -> vector<32x256xf32>
    %16 = arith.addf %12, %15 : vector<32x256xf32>
    %c0_14 = arith.constant 0 : index
    %c0_15 = arith.constant 0 : index
    %17 = vector.load %arg10[%c0_14, %c0_15] : memref<32x256xf32, #tpu.memory_space<vmem>>, vector<32x256xf32>
    tpu.vector_store %arg10[%c0_14, %c0_15], %16 {strides = array<i32>} : memref<32x256xf32, #tpu.memory_space<vmem>>, vector<32x256xf32>,
    %c1_i32 = arith.constant 1 : i32
    %18 = arith.cmpi eq, %arg1, %c1_i32 : i32
    %19 = arith.extui %18 : i1 to i32
    %c0_i32_16 = arith.constant 0 : i32
    %20 = arith.cmpi ne, %19, %c0_i32_16 : i32
    scf.if %20 {
      %c0_17 = arith.constant 0 : index
      %c0_18 = arith.constant 0 : index
      %21 = vector.load %arg10[%c0_17, %c0_18] : memref<32x256xf32, #tpu.memory_space<vmem>>, vector<32x256xf32>
      %c0_19 = arith.constant 0 : index
      %c0_20 = arith.constant 0 : index
      %22 = vector.load %arg6[%c0_19, %c0_20] : memref<1x256xf32, #tpu.memory_space<vmem>>, vector<1x256xf32>
      %23 = vector.broadcast %22 : vector<1x256xf32> to vector<32x256xf32>
      %24 = arith.addf %21, %23 : vector<32x256xf32>
      %c0_21 = arith.constant 0 : index
      %c0_22 = arith.constant 0 : index
      %25 = vector.load %arg8[%c0_21, %c0_22] : memref<32x256xf32, #tpu.memory_space<vmem>>, vector<32x256xf32>
      tpu.vector_store %arg8[%c0_21, %c0_22], %24 {strides = array<i32>} : memref<32x256xf32, #tpu.memory_space<vmem>>, vector<32x256xf32>,
    } else {
    }
    return
  }
  func.func @transform_0(%arg0: i32, %arg1: i32) -> (i32, i32) {
    %c0_i32 = arith.constant 0 : i32
    %c0_i32_0 = arith.constant 0 : i32
    return %arg0, %c0_i32 : i32, i32
  }
  func.func @transform_1(%arg0: i32, %arg1: i32) -> (i32, i32) {
    %c0_i32 = arith.constant 0 : i32
    %c0_i32_0 = arith.constant 0 : i32
    return %c0_i32, %arg1 : i32, i32
  }
  func.func @transform_2(%arg0: i32, %arg1: i32) -> (i32, i32) {
    %c0_i32 = arith.constant 0 : i32
    %c0_i32_0 = arith.constant 0 : i32
    return %c0_i32, %arg1 : i32, i32
  }
  func.func @transform_3(%arg0: i32, %arg1: i32) -> (i32, i32) {
    %c0_i32 = arith.constant 0 : i32
    %c0_i32_0 = arith.constant 0 : i32
    return %arg1, %c0_i32 : i32, i32
  }
  func.func @transform_4(%arg0: i32, %arg1: i32) -> (i32, i32) {
    %c0_i32 = arith.constant 0 : i32
    %c0_i32_0 = arith.constant 0 : i32
    %c0_i32_1 = arith.constant 0 : i32
    return %c0_i32, %c0_i32_0 : i32, i32
  }
  func.func @transform_5(%arg0: i32, %arg1: i32) -> (i32, i32) {
    %c0_i32 = arith.constant 0 : i32
    return %arg0, %arg1 : i32, i32
  }
  func.func @transform_6(%arg0: i32, %arg1: i32) -> (i32, i32) {
    %c0_i32 = arith.constant 0 : i32
    %c0_i32_0 = arith.constant 0 : i32
    return %arg0, %c0_i32 : i32, i32
  }
}

</mosaic_0001>

<bundles_post_ra>
// kernel: tpu_custom_call.1
= control target key start
LH: loop header
LB: loop body
LE: loop exit
PB: predicated region body
PF: predicated region fallthrough
CT: control target
= control target key end

     0   :  { %s2519_s0 = inlined_call_operand.hbm [shape: f32[64,256], index: 0, kind: input, shape index: {}]   ;;  %s2520_s1 = inlined_call_operand.hbm [shape: bf16[256,512], index: 1, kind: input, shape index: {}]   ;;  %s2521_s2 = inlined_call_operand.vmem [shape: f32[1,512], index: 2, kind: input, shape index: {}]   ;;  %s2522_s3 = inlined_call_operand.hbm [shape: bf16[512,256], index: 3, kind: input, shape index: {}]   ;;  %s2523_s4 = inlined_call_operand.vmem [shape: f32[1,256], index: 4, kind: input, shape index: {}]   ;;  %s2524_s5 = inlined_call_operand.hbm [shape: f32[64,512], index: 5, kind: output, shape index: {0}]   ;;  %s2525_s6 = inlined_call_operand.hbm [shape: f32[64,256], index: 6, kind: output, shape index: {1}]  }
   0x1   :  { %2549 = sst [smem:[#allocation28_spill]] %s2519_s0 }
   0x2   :  { %2550 = sst [smem:[#allocation29_spill]] %s2520_s1 }
   0x3   :  { %2551 = sst [smem:[#allocation30_spill]] %s2521_s2 }
   0x4   :  { %2552 = sst [smem:[#allocation31_spill]] %s2522_s3 }
   0x5   :  { %2553 = sst [smem:[#allocation32_spill]] %s2523_s4 }
   0x6   :  { %2554 = sst [smem:[#allocation33_spill]] %s2524_s5 }
   0x7   :  { %2555 = sst [smem:[#allocation34_spill]] %s2525_s6 }
   0x8   :  { %12 = vsyncpa [#allocation5], 0 }
   0x9   :  { %14 = vsyncpa [#allocation5 + $0x1], 0 }
   0xa   :  { %15 = vsyncpa [#allocation8], 0 }
   0xb   :  { %17 = vsyncpa [#allocation8 + $0x1], 0 }
   0xc   :  { %18 = vsyncpa [#allocation6], 0 }
   0xd   :  { %20 = vsyncpa [#allocation6 + $0x1], 0 }
   0xe   :  { %21 = vsyncpa [#allocation12], 0 }
   0xf   :  { %23 = vsyncpa [#allocation12 + $0x1], 0  ;;  %s1921_s21 = smov 0   ;;  %s1923_s22 = smov 0  }
  0x10   :  { %s1925_s23 = smov 0   ;;  %s1927_s24 = smov 0  }
  0x11   :  { %s1929_s25 = smov 0   ;;  %s1931_s26 = smov 0  }
  0x12   :  { %s1933_s27 = smov 0   ;;  %s1935_s28 = smov 0  }
  0x13   :  { %s1937_s29 = smov 0   ;;  %s1939_s30 = smov 0  }
  0x14   :  { %s1941_s7 = smov 0   ;;  %s1943_s8 = smov 0  }
  0x15   :  { %s1945_s9 = smov 0   ;;  %s1947_s10 = smov 0  }
  0x16 LB: > { %2556 = sst [smem:[#allocation17_spill]] %s1839_s26  ;;  %s2526_s11 = sadd.s32 1, %s1863_s8  ;;  %s1871_s10 = sphi %s1947_s10, %s29_s10   ;;  %s1867_s9 = sphi %s1945_s9, %s2629_s9   ;;  %s1863_s8 = sphi %s1943_s8, %s2628_s8   ;;  %s1859_s7 = sphi %s1941_s7, %s2617_s7   ;;  %s1855_s30 = sphi %s1939_s30, %s2627_s30   ;;  %s1851_s29 = sphi %s1937_s29, %s2616_s29   ;;  %s1847_s28 = sphi %s1935_s28, %s2626_s28   ;;  %s1843_s27 = sphi %s1933_s27, %s2625_s27   ;;  %s1839_s26 = sphi %s1931_s26, %s2614_s26   ;;  %s1835_s25 = sphi %s1929_s25, %s2624_s25   ;;  %s1831_s24 = sphi %s1927_s24, %s2623_s24   ;;  %s1827_s23 = sphi %s1925_s23, %s2622_s23   ;;  %s1823_s22 = sphi %s1923_s22, %s2621_s22   ;;  %s1819_s21 = sphi %s1921_s21, %s2620_s21  }
  0x17   : > { %2557 = sst [smem:[#allocation18_spill]] %s1851_s29  ;;  %p2531_p0 = scmp.eq.s32.totalorder %s1871_s10, 0 }
  0x18   : > { %2558 = sst [smem:[#allocation19_spill]] %s1855_s30  ;;  %p1995_p1 = scmp.ge.s32.totalorder %s2526_s11, 2 }
  0x19   : > { %2559 = sst [smem:[#allocation20_spill]] %s1859_s7  ;;  %p81_p2 = scmp.ne.s32.totalorder %s1839_s26, %s1835_s25 }
  0x1a   : > { %2560 = sst [smem:[#allocation21_spill]] %s1867_s9  ;;  %p2530_p4 = scmp.lt.s32.totalorder %s1871_s10, 4 }
  0x1b   : > { %p83_p5 = por %p81_p2, %p2531_p0  ;;  %s263_s14 = sand.u32 1, %s1871_s10  }
  0x1c   : > { %s265_s15 = sand.u32 1, %s1839_s26   ;;  %s1348_s17 = sshll.u32 %s1863_s8, 7 }
  0x1d   : > { %s2009_s16 = sshll.u32 %s265_s15, 8  ;;  %s2562_s1 = sld [smem:[#allocation29_spill]] }
  0x1e   : > { %s267_s13 = scalar_lea.vmem [#allocation7], %s2009_s16  ;;  %p2022_p6 = pnand %p2530_p4, %p83_p5 }
  0x1f   : > { %s274_s11 = sshll.u32 %s267_s13, 4  ;;  %s2027_s15 = scalar_lea.sflag [#allocation8], %s263_s14  ;;  %s2018_s11 = int_to_ptr.vmem [resolvable:$true] %s274_s11 }
  0x20   : > { %p2539_p9 = pneg %p2022_p6 }
  0x23   : > { %s2015_s20 = scalar_lea.hbm %s2562_s1, %s1348_s17  ;;  %s1604_s19 = scalar_lea.hbm %s2562_s1, 8192 }
  0x24   : > { %s1599_s17 = scalar_lea.hbm %s2015_s20, 4096  ;;  %p1605_p12 = scmp.lt.u32.totalorder %s2015_s20, %s2562_s1 }
  0x25   : > { %p1600_p8 = scmp.ne.s32.totalorder %s2015_s20, %s1599_s17  ;;  %p1606_p13 = scmp.lt.u32.totalorder %s1604_s19, %s1599_s17 }
  0x26   : > { %p1608_p5 = scmp.lt.u32.totalorder %s1599_s17, %s2015_s20 }
  0x27   : > { %p1602_p10 = pnand %p2539_p9, %p1600_p8  ;;  %p1607_p2 = por %p1606_p13, %p1605_p12 }
  0x29   : > { %p1603_p11 = pneg %p1602_p10  ;;  %p1609_p4 = por %p1608_p5, %p1607_p2 }
  0x2b   : > { %p1610_p3 = pnand %p1609_p4, %p1603_p11 }
  0x2d   : > { %1613 = shalt.err (!%p1610_p3)
}
  0x2e   : > { %s1614_s14 = scalar_lea.vmem %s2018_s11, 4096  ;;  %s1873_s13 = smov [#allocation7]  }
  0x2f   : > { %p1615_p8 = scmp.ne.s32.totalorder %s2018_s11, %s1614_s14  ;;  %s1619_s18 = sshll.u32 %s1873_s13, 4  ;;  %s1620_s18 = int_to_ptr.vmem [resolvable:$false] %s1619_s18 }
  0x30   : > { %s1621_s5 = scalar_lea.vmem %s1620_s18, 8192  ;;  %p1622_p7 = scmp.lt.s32.totalorder %s2018_s11, %s1620_s18 }
  0x31   : > { %p1617_p10 = pnand %p1615_p8, %p2539_p9  ;;  %p1623_p12 = scmp.lt.s32.totalorder %s1621_s5, %s1614_s14 }
  0x33   : > { %p1618_p0 = pneg %p1617_p10  ;;  %p1624_p13 = por %p1623_p12, %p1622_p7 }
  0x35   : > { %p1625_p2 = pnand %p1624_p13, %p1618_p0 }
  0x37   : > { %1628 = shalt.err (!%p1625_p2)
}
  0x38   : > { %s2534_s7 = smov 256   ;;  %s2532_s17 = smov 128  }
  0x39   : > { %s2533_s19 = smov 8   ;;  %p312_p0 = scmp.lt.s32.totalorder %s1871_s10, 5 }
  0x3a   : > { %1370 = dma.hbm_to_vmem [thread:$0]  (!%p2022_p6), %s2015_s20, 4096, %s2018_s11, %s2027_s15, %s2534_s7, %s2532_s17, %s2533_s19  }
  0x3b   : > { %p2564_p3 = scmp.ge.s32.totalorder %s1871_s10, 1  ;;  %s2066_s13 = sadd.s32 4294967295, %s1871_s10  }
  0x3c   : > { %s1248_s18 = sadd.s32 4294967294, %s1871_s10   ;;  %s2566_s5 = sadd.s32 1, %s1863_s8 }
  0x3d   : > { %p2061_p4 = pnand %p2564_p3, %p312_p0  ;;  %s2631_s5 = smov (%p1995_p1, %s2566_s5), 0 }
  0x3e   : > { %2567 = sst [smem:[#allocation22_spill]] %s2631_s5  ;;  %s41_s11 = sadd.s32 1, %s1867_s9 }
  0x3f   : > { %s2565_s14 = scalar_select %p2061_p4, 1, 0 }
  0x40   : > { %s48_s20 = sadd.s32 1, %s1851_s29  ;;  %s2633_s11 = smov (!%p1995_p1, %s41_s11), %s1867_s9 }
  0x41   : > { %p55_p7 = scmp.ne.s32.totalorder %s1851_s29, %s1847_s28  ;;  %p2541_p11 = scmp.ne.s32.totalorder %s1847_s28, %s1843_s27 }
  0x42   : > { %p43_p5 = scmp.ge.s32.totalorder %s2633_s11, 2  ;;  %p62_p8 = scmp.eq.s32.totalorder %s2066_s13, 0 }
  0x43   : > { %p2568_p10 = scmp.eq.s32.totalorder %s1871_s10, 0  ;;  %s71_s19 = ssub.s32 %s1863_s8, %s2631_s5 }
  0x44   : > { %s2635_s11 = smov (%p43_p5, %s2633_s11), 0  ;;  %p2101_p1 = por %p62_p8, %p2541_p11 }
  0x45   : > { %p2090_p12 = por %p2568_p10, %p55_p7  ;;  %2570 = sst [smem:[#allocation23_spill]] %s2635_s11 }
  0x46   : > { %s2571_s12 = scalar_select %p2101_p1, 1, 0 }
  0x47   : > { %p72_p13 = scmp.eq.s32.totalorder %s71_s19, 0  ;;  %s45_s7 = ssub.s32 %s1867_s9, %s2635_s11 }
  0x48   : > { %2572 = sst [smem:[#allocation24_spill]] %s2571_s12  ;;  %p2573_p2 = scmp.ne.s32.totalorder %s1835_s25, %s1831_s24 }
  0x49   : > { %p46_p3 = scmp.eq.s32.totalorder %s45_s7, 0  ;;  %s172_s5 = sor.u32 %s71_s19, %s45_s7 }
  0x4a   : > { %p2110_p0 = por %p2573_p2, %p62_p8  ;;  %s2575_s4 = sadd.s32 1, %s1839_s26 }
  0x4b   : > { %s2117_s2 = scalar_select %p72_p13, %s1839_s26, %s2575_s4  }
  0x4c   : > { %s2574_s1 = scalar_select %p2110_p0, 1, 0 }
  0x4d   : > { %2576 = sst [smem:[#allocation25_spill]] %s2117_s2  ;;  %p173_p5 = scmp.eq.s32.totalorder %s172_s5, 0 }
  0x4e   : > { %s2120_s30 = scalar_select %p46_p3, %s1851_s29, %s48_s20  }
  0x4f   : > { %s175_s12 = sadd.s32 1, %s1827_s23  ;;  %p185_p10 = scmp.ne.s32.totalorder %s1827_s23, %s1823_s22 }
  0x50   : > { %2577 = sst [smem:[#allocation26_spill]] %s2120_s30  ;;  %p186_p9 = scmp.eq.s32.totalorder %s2066_s13, 3 }
  0x51   : > { %s2127_s24 = scalar_select %p173_p5, %s1827_s23, %s175_s12  }
  0x52   : > { %p2129_p8 = por %p186_p9, %p185_p10  ;;  %p191_p2 = scmp.ne.s32.totalorder %s1823_s22, %s1819_s21 }
  0x53   : > { %2578 = sst [smem:[#allocation27_spill]] %s2127_s24  ;;  %p192_p11 = scmp.eq.s32.totalorder %s1248_s18, 3 }
  0x54   : > { %s2579_s11 = scalar_select %p2129_p8, 1, 0 }
  0x55   : > { %p2138_p0 = por %p186_p9, %p55_p7  ;;  %s241_s7 = sand.u32 1, %s1851_s29  }
  0x56   : > { %s1347_s19 = sshll.u32 %s1867_s9, 10  ;;  %p2144_p13 = por %p192_p11, %p191_p2 }
  0x57   : > { %s2580_s4 = scalar_select %p2138_p0, 1, 0 }
  0x58   : > { %s2581_s5 = scalar_select %p2144_p13, 1, 0 }
  0x59   : > { %p2582_p3 = scmp.ne.s32.totalorder %s1847_s28, %s1843_s27  ;;  %s1251_s12 = sshll.u32 %s241_s7, 6 }
  0x5a   : > { %s2584_s0 = sld [smem:[#allocation28_spill]]  ;;  %s245_s9 = scalar_lea.vmem [#allocation4], %s1251_s12 }
  0x5b   : > { %p2151_p5 = por %p192_p11, %p2582_p3  ;;  %s253_s29 = sshll.u32 %s245_s9, 4  ;;  %s2168_s29 = int_to_ptr.vmem [resolvable:$true] %s253_s29 }
  0x5c   : > { %p2585_p9 = scmp.lt.s32.totalorder %s1871_s10, 4  ;;  %s2170_s24 = scalar_lea.sflag [#allocation5], %s241_s7 }
  0x5d   : > { %s2583_s20 = scalar_select %p2151_p5, 1, 0 }
  0x5e   : > { %p2164_p7 = pnand %p2585_p9, %p2090_p12 }
  0x60   : > { %s2158_s18 = scalar_lea.hbm %s2584_s0, %s1347_s19  ;;  %p1631_p10 = pneg %p2164_p7 }
  0x61   : > { %s1629_s2 = scalar_lea.hbm %s2158_s18, 1024  ;;  %s1634_s17 = scalar_lea.hbm %s2584_s0, 2048 }
  0x62   : > { %p1630_p11 = scmp.ne.s32.totalorder %s2158_s18, %s1629_s2  ;;  %p1635_p12 = scmp.lt.u32.totalorder %s2158_s18, %s2584_s0 }
  0x63   : > { %p1636_p9 = scmp.lt.u32.totalorder %s1634_s17, %s1629_s2  ;;  %p1638_p13 = scmp.lt.u32.totalorder %s1629_s2, %s2158_s18 }
  0x64   : > { %p1632_p2 = pnand %p1631_p10, %p1630_p11 }
  0x65   : > { %p1637_p5 = por %p1636_p9, %p1635_p12 }
  0x66   : > { %p1633_p3 = pneg %p1632_p2 }
  0x67   : > { %p1639_p0 = por %p1638_p13, %p1637_p5 }
  0x69   : > { %p1640_p8 = pnand %p1639_p0, %p1633_p3 }
  0x6b   : > { %1643 = shalt.err (!%p1640_p8)
}
  0x6c   : > { %s1644_s7 = scalar_lea.vmem %s2168_s29, 1024  ;;  %s1877_s30 = smov [#allocation4]  }
  0x6d   : > { %p1645_p11 = scmp.ne.s32.totalorder %s2168_s29, %s1644_s7  ;;  %s1649_s9 = sshll.u32 %s1877_s30, 4  ;;  %s1650_s9 = int_to_ptr.vmem [resolvable:$false] %s1649_s9 }
  0x6e   : > { %s1651_s19 = scalar_lea.vmem %s1650_s9, 2048  ;;  %p1652_p4 = scmp.lt.s32.totalorder %s2168_s29, %s1650_s9 }
  0x6f   : > { %p1647_p2 = pnand %p1645_p11, %p1631_p10  ;;  %p1653_p12 = scmp.lt.s32.totalorder %s1651_s19, %s1644_s7 }
  0x71   : > { %p1648_p1 = pneg %p1647_p2  ;;  %p1654_p9 = por %p1653_p12, %p1652_p4 }
  0x73   : > { %p1655_p13 = pnand %p1654_p9, %p1648_p1 }
  0x75   : > { %1658 = shalt.err (!%p1655_p13)
}
  0x76   : > { %s1878_s2 = smov 16   ;;  %s2587_s17 = smov 256  }
  0x77   : > { %1367 = dma.hbm_to_vmem [thread:$0]  (!%p2164_p7), %s2158_s18, 1024, %s2168_s29, %s2170_s24, %s2587_s17, %s2587_s17, %s1878_s2  }
  0x78   : > { %s1350_s12 = sshll.u32 %s1863_s8, 12  ;;  %s296_s30 = scalar_lea.vmem [#allocation9], %s2009_s16 }
  0x79   : > { %s304_s0 = sshll.u32 %s296_s30, 4  ;;  %s2588_s3 = sld [smem:[#allocation31_spill]]  ;;  %s2207_s0 = int_to_ptr.vmem [resolvable:$true] %s304_s0 }
  0x7a   : > { %p2589_p1 = pneg %p2022_p6 }
  0x7f   : > { %s2205_s19 = scalar_lea.hbm %s2588_s3, %s1350_s12  ;;  %s1664_s24 = scalar_lea.hbm %s2588_s3, 8192 }
  0x80   : > { %s1659_s26 = scalar_lea.hbm %s2205_s19, 4096  ;;  %p1665_p5 = scmp.lt.u32.totalorder %s2205_s19, %s2588_s3 }
  0x81   : > { %p1660_p4 = scmp.ne.s32.totalorder %s2205_s19, %s1659_s26  ;;  %p1666_p7 = scmp.lt.u32.totalorder %s1664_s24, %s1659_s26 }
  0x82   : > { %p1668_p3 = scmp.lt.u32.totalorder %s1659_s26, %s2205_s19 }
  0x83   : > { %p1662_p0 = pnand %p1660_p4, %p2589_p1  ;;  %p1667_p10 = por %p1666_p7, %p1665_p5 }
  0x85   : > { %p1663_p8 = pneg %p1662_p0  ;;  %p1669_p11 = por %p1668_p3, %p1667_p10 }
  0x87   : > { %p1670_p2 = pnand %p1669_p11, %p1663_p8 }
  0x89   : > { %1673 = shalt.err (!%p1670_p2)
}
  0x8a   : > { %s1674_s17 = scalar_lea.vmem %s2207_s0, 4096  ;;  %p2590_p9 = pmov %p2589_p1 }
  0x8b   : > { %p1675_p12 = scmp.ne.s32.totalorder %s2207_s0, %s1674_s17  ;;  %s1879_s12 = smov [#allocation9]  }
  0x8c   : > { %s1679_s30 = sshll.u32 %s1879_s12, 4  ;;  %s1680_s30 = int_to_ptr.vmem [resolvable:$false] %s1679_s30 }
  0x8d   : > { %p1677_p13 = pnand %p1675_p12, %p2590_p9  ;;  %s1681_s9 = scalar_lea.vmem %s1680_s30, 8192 }
  0x8e   : > { %p1682_p1 = scmp.lt.s32.totalorder %s2207_s0, %s1680_s30  ;;  %p1683_p0 = scmp.lt.s32.totalorder %s1681_s9, %s1674_s17 }
  0x8f   : > { %p1678_p4 = pneg %p1677_p13 }
  0x90   : > { %p1684_p5 = por %p1683_p0, %p1682_p1 }
  0x92   : > { %p1685_p7 = pnand %p1684_p5, %p1678_p4 }
  0x94   : > { %1688 = shalt.err (!%p1685_p7)
}
  0x95   : > { %s2591_s7 = smov 8   ;;  %s2592_s26 = smov 128  }
  0x96   : > { %1373 = dma.hbm_to_vmem [thread:$0]  (!%p2022_p6), %s2205_s19, 4096, %s2207_s0, %s2027_s15, %s2592_s26, %s2592_s26, %s2591_s7  }
  0x97   : > { %p2593_p8 = scmp.ne.s32.totalorder %s2565_s14, 0 }
  0x98   : > { %s2594_s29 = sld [smem:[#allocation24_spill]] (!%p2593_p8)  ;;  %s2239_s16 = sand.u32 (!%p2593_p8), 1, %s1847_s28  }
  0x99   : > { %316 = sbr.rel (%p2593_p8) target bundleno = 769 (0x301), region = 40  ;;  %s1263_s24 = sshll.u32 (!%p2593_p8), %s2239_s16, 6 }
  0x9a   : > { %s319_s18 = scalar_lea.sflag (!%p2593_p8), [#allocation5], %s2239_s16  ;;  %s2243_s2 = scalar_lea.vmem (!%p2593_p8), [#allocation4], %s1263_s24 }
  0x9e   : > { %p2595_p10 = scmp.ne.s32.totalorder (!%p2593_p8), %s2594_s29, 0 }
  0xa0   : > { %1802 = dma.done.wait (%p2595_p10), %s319_s18, 1024  }
  0xa1   : > { %1804 = vsyncadd (%p2595_p10), %s319_s18, 4294966272  ;;  %s327_s0 = sand.u32 1, %s2066_s13   ;;  %s329_s6 = sand.u32 1, %s1835_s25  }
  0xa2   : > { %s1264_s15 = sshll.u32 %s329_s6, 8  ;;  %s328_s14 = scalar_lea.sflag [#allocation8], %s327_s0 }
  0xa3   : > { %s2251_s19 = scalar_lea.vmem [#allocation7], %s1264_s15  ;;  %p2596_p6 = scmp.ne.s32.totalorder %s2574_s1, 0 }
  0xa5   : > { %1806 = dma.done.wait (%p2596_p6), %s328_s14, 8192  }
  0xa6   : > { %1808 = vsyncadd (%p2596_p6), %s328_s14, 4294959104  ;;  %s2597_s17 = sld [smem:[#allocation19_spill]]  ;;  %s378_s12 = sand.u32 1, %s1823_s22  }
  0xa7   : > { %s1266_s30 = sshll.u32 %s378_s12, 6  ;;  %s2598_s29 = sld [smem:[#allocation30_spill]] }
  0xa8   : > { %s2271_s1 = scalar_lea.vmem [#allocation9], %s1264_s15  ;;  %s2273_s0 = scalar_lea.vmem [#allocation10], %s1266_s30 }
  0xa9   : > { %s2275_s6 = scalar_lea.vmem [#allocation11], %s1263_s24 }
  0xac   : > { %s2261_s9 = sshll.u32 %s2597_s17, 1  ;;  %p1269_p11 = scmp.ne.s32.totalorder %s2597_s17, 0 }
  0xad   : > { %p391_p3 = scmp.lt.s32.totalorder %s2261_s9, 3  ;;  %v413_v0 = vlaneseq (!%p1269_p11)  ;;  %v1880_v1 = vmov (!%p1269_p11), 0.0   ;;  %s2599_s14 = sld [smem:[#allocation32_spill]] (!%p1269_p11)  ;;  %v403_v4 = vld [vmem:[%s2243_s2] sm:$0xff] (!%p1269_p11)  ;;  %v405_v5 = vld [vmem:[%s2243_s2 + $0x10] sm:$0xff] (!%p1269_p11)  ;;  %v404_v8 = vld [vmem:[%s2243_s2 + $0x8] sm:$0xff] (!%p1269_p11) }
  0xae   : > { %402 = sbr.rel (%p1269_p11) target bundleno = 188 (0xbc), region = 56  ;;  %439 = vst [vmem:[#allocation3] sm:$0xff] (!%p1269_p11), %v1880_v1  ;;  %440 = vst [vmem:[#allocation3 + $0x8] sm:$0xff] (!%p1269_p11), %v1880_v1  ;;  %v406_v9 = vld [vmem:[%s2243_s2 + $0x18] sm:$0xff] (!%p1269_p11)  ;;  %v407_v10 = vld [vmem:[%s2243_s2 + $0x20] sm:$0xff] (!%p1269_p11) }
  0xaf   : > { %s2265_s13 = scalar_select %p391_p3, %s2261_s9, 3 }
  0xb0   : > { %441 = vst [vmem:[#allocation3 + $0x10] sm:$0xff] (!%p1269_p11), %v1880_v1  ;;  %442 = vst [vmem:[#allocation3 + $0x18] sm:$0xff] (!%p1269_p11), %v1880_v1  ;;  %v414_v2 = vshrl.u32 (!%p1269_p11), %v413_v0, 7  ;;  %v409_v13 = vld [vmem:[%s2243_s2 + $0x30] sm:$0xff] (!%p1269_p11)  ;;  %v408_v14 = vld [vmem:[%s2243_s2 + $0x28] sm:$0xff] (!%p1269_p11) }
  0xb1   : > { %s393_s18 = scalar_lea.vmem %s2598_s29, %s2265_s13  ;;  %443 = vst [vmem:[#allocation3 + $0x20] sm:$0xff] (!%p1269_p11), %v1880_v1  ;;  %444 = vst [vmem:[#allocation3 + $0x28] sm:$0xff] (!%p1269_p11), %v1880_v1  ;;  %v410_v15 = vld [vmem:[%s2243_s2 + $0x38] sm:$0xff] (!%p1269_p11) }
  0xb2   : > { %445 = vst [vmem:[#allocation3 + $0x30] sm:$0xff] (!%p1269_p11), %v1880_v1  ;;  %446 = vst [vmem:[#allocation3 + $0x38] sm:$0xff] (!%p1269_p11), %v1880_v1  ;;  %v415_v6 = vsub.s32 (!%p1269_p11), 0, %v414_v2  ;;  %v419_v7 = vsub.s32 (!%p1269_p11), 1, %v414_v2 }
  0xb3   : > { %v411_v3 = vld [vmem:[%s2599_s14] sm:$0x3] (!%p1269_p11) }
  0xb4   : > { %v416_v11 = vrot.slane (!%p1269_p11), %v411_v3, %v415_v6  ;;  %v420_v12 = vrot.slane (!%p1269_p11), %v411_v3, %v419_v7 }
  0xb6   : > { %v423_v16 = vsub.f32 %v403_v4, %v416_v11  ;;  %v425_v17 = vsub.f32 %v405_v5, %v416_v11  ;;  %v424_v18 = vsub.f32 %v404_v8, %v420_v12  ;;  %v426_v19 = vsub.f32 %v406_v9, %v420_v12 }
  0xb7   : > { %v427_v20 = vsub.f32 %v407_v10, %v416_v11  ;;  %v429_v21 = vsub.f32 %v409_v13, %v416_v11  ;;  %v428_v22 = vsub.f32 %v408_v14, %v420_v12  ;;  %v430_v23 = vsub.f32 %v410_v15, %v420_v12 }
  0xb8   : > { %v431_v24 = vpack.c.bf16 %v425_v17, %v423_v16  ;;  %v432_v25 = vpack.c.bf16 %v426_v19, %v424_v18 }
  0xb9   : > { %v433_v26 = vpack.c.bf16 %v429_v21, %v427_v20  ;;  %v434_v27 = vpack.c.bf16 %v430_v23, %v428_v22 }
  0xba   : > { %435 = vst [vmem:[#allocation2] sm:$0xff] %v431_v24  ;;  %436 = vst [vmem:[#allocation2 + $0x8] sm:$0xff] %v432_v25 }
  0xbb   : > { %437 = vst [vmem:[#allocation2 + $0x10] sm:$0xff] %v433_v26  ;;  %438 = vst [vmem:[#allocation2 + $0x18] sm:$0xff] %v434_v27 }
  0xbc PF: > { %v1503_v28 = vld [vmem:[%s2251_s19 + $0x4] ss:$8 sps:$4 sm:$0xff]   ;;  %v1505_v29 = vld [vmem:[%s2251_s19] ss:$8 sps:$4 sm:$0xff]   ;;  %v1506_v30 = vld [vmem:[%s2251_s19 + $0x14] ss:$8 sps:$4 sm:$0xff]  }
  0xbd   : > { %655 = vmatprep.subr.bf16.mxu0 %v1503_v28  ;;  %v1508_v31 = vld [vmem:[%s2251_s19 + $0x10] ss:$8 sps:$4 sm:$0xff]   ;;  %v1509_v32 = vld [vmem:[%s2251_s19 + $0x24] ss:$8 sps:$4 sm:$0xff]   ;;  %v1511_v33 = vld [vmem:[%s2251_s19 + $0x20] ss:$8 sps:$4 sm:$0xff]  }
  0xbe   : > { %656 = vmatpush1.bf16.msra.mxu0 %v1505_v29  ;;  %v1512_v34 = vld [vmem:[%s2251_s19 + $0x34] ss:$8 sps:$4 sm:$0xff]   ;;  %v1514_v35 = vld [vmem:[%s2251_s19 + $0x30] ss:$8 sps:$4 sm:$0xff]   ;;  %v1515_v36 = vld [vmem:[%s2251_s19 + $0x44] ss:$8 sps:$4 sm:$0xff]  }
  0xbf   : > { %657 = vmatprep.subr.bf16.mxu0 %v1506_v30  ;;  %v1517_v37 = vld [vmem:[%s2251_s19 + $0x40] ss:$8 sps:$4 sm:$0xff]   ;;  %v1518_v38 = vld [vmem:[%s2251_s19 + $0x54] ss:$8 sps:$4 sm:$0xff]   ;;  %v1520_v39 = vld [vmem:[%s2251_s19 + $0x50] ss:$8 sps:$4 sm:$0xff]  }
  0xc0   : > { %v1521_v40 = vld [vmem:[%s2251_s19 + $0x64] ss:$8 sps:$4 sm:$0xff]   ;;  %v1523_v42 = vld [vmem:[%s2251_s19 + $0x60] ss:$8 sps:$4 sm:$0xff]   ;;  %v1524_v43 = vld [vmem:[%s2251_s19 + $0x74] ss:$8 sps:$4 sm:$0xff]  }
  0xc1   : > { %v448_v41 = vld [vmem:[#allocation2 + $0x8] sm:$0xff]  ;;  %v1554_v46 = vld [vmem:[%s2271_s1 + $0x14] ss:$8 sps:$4 sm:$0xff]   ;;  %v1556_v47 = vld [vmem:[%s2271_s1 + $0x10] ss:$8 sps:$4 sm:$0xff]   ;;  %s2601_s30 = sld [smem:[#allocation19_spill]] }
  0xc2   : > { %658 = vmatpush1.bf16.msra.mxu0 %v1508_v31  ;;  %687 = vmatprep.mubr.bf16.mxu0 %v448_v41  ;;  %v1551_v44 = vld [vmem:[%s2271_s1 + $0x4] ss:$8 sps:$4 sm:$0xff]   ;;  %v1553_v45 = vld [vmem:[%s2271_s1] ss:$8 sps:$4 sm:$0xff]   ;;  %v1526_v48 = vld [vmem:[%s2251_s19 + $0x70] ss:$8 sps:$4 sm:$0xff]  }
  0xc3   : > { %659 = vmatprep.subr.bf16.mxu0 %v1509_v32  ;;  %928 = vmatprep.subr.bf16.mxu1 %v1551_v44  ;;  %v1557_v49 = vld [vmem:[%s2271_s1 + $0x24] ss:$8 sps:$4 sm:$0xff]   ;;  %v1559_v51 = vld [vmem:[%s2271_s1 + $0x20] ss:$8 sps:$4 sm:$0xff]   ;;  %v1560_v53 = vld [vmem:[%s2271_s1 + $0x34] ss:$8 sps:$4 sm:$0xff]   ;;  %v485_v32 = vlaneseq }
  0xc4   : > { %929 = vmatpush1.bf16.msra.mxu1 %v1553_v45  ;;  %v1527_v50 = vld [vmem:[%s2251_s19 + $0x84] ss:$8 sps:$4 sm:$0xff]   ;;  %v1529_v52 = vld [vmem:[%s2251_s19 + $0x80] ss:$8 sps:$4 sm:$0xff]   ;;  %v1530_v54 = vld [vmem:[%s2251_s19 + $0x94] ss:$8 sps:$4 sm:$0xff]  }
  0xc5   : > { %930 = vmatprep.subr.bf16.mxu1 %v1554_v46  ;;  %v1562_v55 = vld [vmem:[%s2271_s1 + $0x30] ss:$8 sps:$4 sm:$0xff]   ;;  %v1563_v57 = vld [vmem:[%s2271_s1 + $0x44] ss:$8 sps:$4 sm:$0xff]   ;;  %v1565_v59 = vld [vmem:[%s2271_s1 + $0x40] ss:$8 sps:$4 sm:$0xff]  }
  0xc6   : > { %660 = vmatpush1.bf16.msra.mxu0 %v1511_v33  ;;  %v1532_v56 = vld [vmem:[%s2251_s19 + $0x90] ss:$8 sps:$4 sm:$0xff]   ;;  %v1533_v58 = vld [vmem:[%s2251_s19 + $0xa4] ss:$8 sps:$4 sm:$0xff]   ;;  %v1535_v60 = vld [vmem:[%s2251_s19 + $0xa0] ss:$8 sps:$4 sm:$0xff]  }
  0xc7   : > { %661 = vmatprep.subr.bf16.mxu0 %v1512_v34  ;;  %v1566_v61 = vld [vmem:[%s2271_s1 + $0x54] ss:$8 sps:$4 sm:$0xff]   ;;  %v1568_v63 = vld [vmem:[%s2271_s1 + $0x50] ss:$8 sps:$4 sm:$0xff]   ;;  %v1569_v1 = vld [vmem:[%s2271_s1 + $0x64] ss:$8 sps:$4 sm:$0xff]  }
  0xc8   : > { %931 = vmatpush1.bf16.msra.mxu1 %v1556_v47  ;;  %v1536_v62 = vld [vmem:[%s2251_s19 + $0xb4] ss:$8 sps:$4 sm:$0xff]   ;;  %v1538_v0 = vld [vmem:[%s2251_s19 + $0xb0] ss:$8 sps:$4 sm:$0xff]   ;;  %v1539_v2 = vld [vmem:[%s2251_s19 + $0xc4] ss:$8 sps:$4 sm:$0xff]  }
  0xc9   : > { %932 = vmatprep.subr.bf16.mxu1 %v1557_v49  ;;  %v1571_v3 = vld [vmem:[%s2271_s1 + $0x60] ss:$8 sps:$4 sm:$0xff]   ;;  %v1572_v5 = vld [vmem:[%s2271_s1 + $0x74] ss:$8 sps:$4 sm:$0xff]   ;;  %v1574_v7 = vld [vmem:[%s2271_s1 + $0x70] ss:$8 sps:$4 sm:$0xff]  }
  0xca   : > { %662 = vmatpush1.bf16.msra.mxu0 %v1514_v35  ;;  %v1541_v4 = vld [vmem:[%s2251_s19 + $0xc0] ss:$8 sps:$4 sm:$0xff]   ;;  %v1542_v6 = vld [vmem:[%s2251_s19 + $0xd4] ss:$8 sps:$4 sm:$0xff]   ;;  %v1544_v8 = vld [vmem:[%s2251_s19 + $0xd0] ss:$8 sps:$4 sm:$0xff]  }
  0xcb   : > { %663 = vmatprep.subr.bf16.mxu0 %v1515_v36  ;;  %v1575_v9 = vld [vmem:[%s2271_s1 + $0x84] ss:$8 sps:$4 sm:$0xff]   ;;  %v1577_v11 = vld [vmem:[%s2271_s1 + $0x80] ss:$8 sps:$4 sm:$0xff]   ;;  %v1578_v13 = vld [vmem:[%s2271_s1 + $0x94] ss:$8 sps:$4 sm:$0xff]  }
  0xcc   : > { %933 = vmatpush1.bf16.msra.mxu1 %v1559_v51  ;;  %v1545_v10 = vld [vmem:[%s2251_s19 + $0xe4] ss:$8 sps:$4 sm:$0xff]   ;;  %v1547_v12 = vld [vmem:[%s2251_s19 + $0xe0] ss:$8 sps:$4 sm:$0xff]   ;;  %v1548_v14 = vld [vmem:[%s2251_s19 + $0xf4] ss:$8 sps:$4 sm:$0xff]  }
  0xcd   : > { %934 = vmatprep.subr.bf16.mxu1 %v1560_v53  ;;  %v1580_v15 = vld [vmem:[%s2271_s1 + $0x90] ss:$8 sps:$4 sm:$0xff]   ;;  %v1581_v17 = vld [vmem:[%s2271_s1 + $0xa4] ss:$8 sps:$4 sm:$0xff]   ;;  %v1583_v18 = vld [vmem:[%s2271_s1 + $0xa0] ss:$8 sps:$4 sm:$0xff]  }
  0xce   : > { %664 = vmatpush1.bf16.msra.mxu0 %v1517_v37  ;;  %v1550_v16 = vld [vmem:[%s2251_s19 + $0xf0] ss:$8 sps:$4 sm:$0xff]   ;;  %v447_v19 = vld [vmem:[#allocation2] sm:$0xff]  ;;  %v1584_v20 = vld [vmem:[%s2271_s1 + $0xb4] ss:$8 sps:$4 sm:$0xff]   ;;  %v2353_v33 = vshrl.u32 %v485_v32, 7 }
  0xcf   : > { %665 = vmatprep.subr.bf16.mxu0 %v1518_v38  ;;  %v450_v21 = vld [vmem:[#allocation2 + $0x18] sm:$0xff]  ;;  %v1587_v23 = vld [vmem:[%s2271_s1 + $0xc4] ss:$8 sps:$4 sm:$0xff]   ;;  %v1589_v24 = vld [vmem:[%s2271_s1 + $0xc0] ss:$8 sps:$4 sm:$0xff]   ;;  %p1334_p2 = scmp.ne.s32.totalorder %s2601_s30, 1 }
  0xd0   : > { %935 = vmatpush1.bf16.msra.mxu1 %v1562_v55  ;;  %v1586_v22 = vld [vmem:[%s2271_s1 + $0xb0] ss:$8 sps:$4 sm:$0xff]   ;;  %v1590_v26 = vld [vmem:[%s2271_s1 + $0xd4] ss:$8 sps:$4 sm:$0xff]   ;;  %v1593_v28 = vld [vmem:[%s2271_s1 + $0xe4] ss:$8 sps:$4 sm:$0xff]  }
  0xd1   : > { %936 = vmatprep.subr.bf16.mxu1 %v1563_v57  ;;  %v449_v25 = vld [vmem:[#allocation2 + $0x10] sm:$0xff]  ;;  %v1595_v29 = vld [vmem:[%s2271_s1 + $0xe0] ss:$8 sps:$4 sm:$0xff]   ;;  %v487_v34 = vsub.s32 0, %v2353_v33  ;;  %v491_v36 = vsub.s32 1, %v2353_v33  ;;  %s2602_s26 = sld [smem:[#allocation32_spill]] (!%p1334_p2) }
  0xd2   : > { %666 = vmatpush1.bf16.msra.mxu0 %v1520_v39  ;;  %v1592_v27 = vld [vmem:[%s2271_s1 + $0xd0] ss:$8 sps:$4 sm:$0xff]   ;;  %v1596_v30 = vld [vmem:[%s2271_s1 + $0xf4] ss:$8 sps:$4 sm:$0xff]   ;;  %v483_v35 = vld [vmem:[%s393_s18] sm:$0x3] }
  0xd3   : > { %667 = vmatprep.subr.bf16.mxu0 %v1521_v40  ;;  %v1598_v31 = vld [vmem:[%s2271_s1 + $0xf0] ss:$8 sps:$4 sm:$0xff]   ;;  %v488_v37 = vrot.slane %v483_v35, %v487_v34  ;;  %v492_v38 = vrot.slane %v483_v35, %v491_v36 }
  0xd4   : > { %937 = vmatpush1.bf16.msra.mxu1 %v1565_v59 }
  0xd5   : > { %938 = vmatprep.subr.bf16.mxu1 %v1566_v61 }
  0xd6   : > { %668 = vmatpush1.bf16.msra.mxu0 %v1523_v42 }
  0xd7   : > { %669 = vmatprep.subr.bf16.mxu0 %v1524_v43 }
  0xd8   : > { %939 = vmatpush1.bf16.msra.mxu1 %v1568_v63 }
  0xd9   : > { %940 = vmatprep.subr.bf16.mxu1 %v1569_v1 }
  0xda   : > { %670 = vmatpush1.bf16.msra.mxu0 %v1526_v48 }
  0xdb   : > { %671 = vmatprep.subr.bf16.mxu0 %v1527_v50 }
  0xdc   : > { %941 = vmatpush1.bf16.msra.mxu1 %v1571_v3  ;;  %v724_v3 = vld [vmem:[#allocation3] sm:$0xff] }
  0xdd   : > { %942 = vmatprep.subr.bf16.mxu1 %v1572_v5 }
  0xde   : > { %672 = vmatpush1.bf16.msra.mxu0 %v1529_v52 }
  0xdf   : > { %673 = vmatprep.subr.bf16.mxu0 %v1530_v54 }
  0xe0   : > { %943 = vmatpush1.bf16.msra.mxu1 %v1574_v7 }
  0xe1   : > { %944 = vmatprep.subr.bf16.mxu1 %v1575_v9  ;;  %v727_v9 = vld [vmem:[#allocation3 + $0x18] sm:$0xff] }
  0xe2   : > { %674 = vmatpush1.bf16.msra.mxu0 %v1532_v56 }
  0xe3   : > { %675 = vmatprep.subr.bf16.mxu0 %v1533_v58 }
  0xe4   : > { %945 = vmatpush1.bf16.msra.mxu1 %v1577_v11 }
  0xe5   : > { %946 = vmatprep.subr.bf16.mxu1 %v1578_v13 }
  0xe6   : > { %676 = vmatpush1.bf16.msra.mxu0 %v1535_v60 }
  0xe7   : > { %677 = vmatprep.subr.bf16.mxu0 %v1536_v62 }
  0xe8   : > { %947 = vmatpush1.bf16.msra.mxu1 %v1580_v15  ;;  %v728_v15 = vld [vmem:[#allocation3 + $0x20] sm:$0xff] }
  0xe9   : > { %948 = vmatprep.subr.bf16.mxu1 %v1581_v17 }
  0xea   : > { %678 = vmatpush1.bf16.msra.mxu0 %v1538_v0 }
  0xeb   : > { %679 = vmatprep.subr.bf16.mxu0 %v1539_v2 }
  0xec   : > { %949 = vmatpush1.bf16.msra.mxu1 %v1583_v18  ;;  %v730_v18 = vld [vmem:[#allocation3 + $0x30] sm:$0xff] }
  0xed   : > { %950 = vmatprep.subr.bf16.mxu1 %v1584_v20 }
  0xee   : > { %680 = vmatpush1.bf16.msra.mxu0 %v1541_v4  ;;  %v725_v4 = vld [vmem:[#allocation3 + $0x8] sm:$0xff] }
  0xef   : > { %681 = vmatprep.subr.bf16.mxu0 %v1542_v6  ;;  %v726_v6 = vld [vmem:[#allocation3 + $0x10] sm:$0xff] }
  0xf0   : > { %951 = vmatpush1.bf16.msra.mxu1 %v1586_v22 }
  0xf1   : > { %952 = vmatprep.subr.bf16.mxu1 %v1587_v23 }
  0xf2   : > { %682 = vmatpush1.bf16.msra.mxu0 %v1544_v8 }
  0xf3   : > { %683 = vmatprep.subr.bf16.mxu0 %v1545_v10 }
  0xf4   : > { %953 = vmatpush1.bf16.msra.mxu1 %v1589_v24 }
  0xf5   : > { %954 = vmatprep.subr.bf16.mxu1 %v1590_v26 }
  0xf6   : > { %684 = vmatpush1.bf16.msra.mxu0 %v1547_v12 }
  0xf7   : > { %685 = vmatprep.subr.bf16.mxu0 %v1548_v14 }
  0xf8   : > { %955 = vmatpush1.bf16.msra.mxu1 %v1592_v27 }
  0xf9   : > { %956 = vmatprep.subr.bf16.mxu1 %v1593_v28  ;;  %v1009_v28 = vld [vmem:[%s2602_s26] sm:$0x3] (!%p1334_p2) }
  0xfa   : > { %686 = vmatpush1.bf16.msra.mxu0 %v1550_v16  ;;  %v729_v16 = vld [vmem:[#allocation3 + $0x28] sm:$0xff] }
  0xfc   : > { %957 = vmatpush1.bf16.msra.mxu1 %v1595_v29 }
  0xfd   : > { %688 = vmatmul.mubr.bf16.vlgmr.msra.gmra.mrb[0].mxu0 %v447_v19  ;;  %958 = vmatprep.subr.bf16.mxu1 %v1596_v30  ;;  %v1014_v30 = vrot.slane (!%p1334_p2), %v1009_v28, %v487_v34 }
  0xfe   : > { %697 = vmatprep.mubr.bf16.mxu0 %v450_v21  ;;  %v731_v21 = vld [vmem:[#allocation3 + $0x38] sm:$0xff] }
 0x100   : > { %959 = vmatpush1.bf16.msra.mxu1 %v1598_v31  ;;  %v1018_v31 = vrot.slane (!%p1334_p2), %v1009_v28, %v491_v36 }
 0x105   : > { %698 = vmatmul.mubr.bf16.gmra.mrb[4].mxu0 %v449_v25 }
 0x1d0   : > { %v689_v39 = vpop.f32.mrb[0].mxu0 }
 0x1d1   : > { %v690_v40 = vadd.f32 %v689_v39, %v488_v37  ;;  %v691_v41 = vpop.f32.mrb[1].mxu0 }
 0x1d2   : > { %v692_v42 = vadd.f32 %v691_v41, %v492_v38  ;;  %v693_v43 = vpop.f32.mrb[2].mxu0 }
 0x1d3   : > { %v708_v44 = vmax.f32 %v690_v40, 0.0  ;;  %v694_v45 = vadd.f32 %v693_v43, %v488_v37  ;;  %v695_v46 = vpop.f32.mrb[3].mxu0 }
 0x1d4   : > { %v709_v47 = vmax.f32 %v692_v42, 0.0  ;;  %v696_v48 = vadd.f32 %v695_v46, %v492_v38 }
 0x1d5   : > { %716 = vst [vmem:[%s2273_s0] sm:$0xff] %v708_v44  ;;  %v710_v49 = vmax.f32 %v694_v45, 0.0 }
 0x1d6   : > { %717 = vst [vmem:[%s2273_s0 + $0x8] sm:$0xff] %v709_v47  ;;  %v711_v50 = vmax.f32 %v696_v48, 0.0 }
 0x1d7   : > { %718 = vst [vmem:[%s2273_s0 + $0x10] sm:$0xff] %v710_v49  ;;  %v732_v51 = vpack.c.bf16 %v710_v49, %v708_v44 }
 0x1d8   : > { %719 = vst [vmem:[%s2273_s0 + $0x18] sm:$0xff] %v711_v50  ;;  %v699_v52 = vpop.f32.mrb[4].mxu0  ;;  %v733_v53 = vpack.c.bf16 %v711_v50, %v709_v47 }
 0x1d9   : > { %v700_v54 = vadd.f32 %v699_v52, %v488_v37  ;;  %v701_v55 = vpop.f32.mrb[5].mxu0 }
 0x1da   : > { %v702_v56 = vadd.f32 %v701_v55, %v492_v38  ;;  %v703_v57 = vpop.f32.mrb[6].mxu0  ;;  %960 = vmatprep.mubr.bf16.mxu1 %v733_v53 }
 0x1db   : > { %v712_v58 = vmax.f32 %v700_v54, 0.0  ;;  %v704_v59 = vadd.f32 %v703_v57, %v488_v37  ;;  %v705_v60 = vpop.f32.mrb[7].mxu0  ;;  %961 = vmatmul.mubr.bf16.vlgmr.msra.gmra.mrb[0].mxu1 %v732_v51 }
 0x1dc   : > { %v713_v61 = vmax.f32 %v702_v56, 0.0  ;;  %v706_v62 = vadd.f32 %v705_v60, %v492_v38 }
 0x1dd   : > { %720 = vst [vmem:[%s2273_s0 + $0x20] sm:$0xff] %v712_v58  ;;  %v714_v63 = vmax.f32 %v704_v59, 0.0 }
 0x1de   : > { %721 = vst [vmem:[%s2273_s0 + $0x28] sm:$0xff] %v713_v61  ;;  %v715_v0 = vmax.f32 %v706_v62, 0.0 }
 0x1df   : > { %722 = vst [vmem:[%s2273_s0 + $0x30] sm:$0xff] %v714_v63  ;;  %v734_v1 = vpack.c.bf16 %v714_v63, %v712_v58 }
 0x1e0   : > { %723 = vst [vmem:[%s2273_s0 + $0x38] sm:$0xff] %v715_v0  ;;  %v735_v2 = vpack.c.bf16 %v715_v0, %v713_v61 }
 0x1e2   : > { %970 = vmatprep.mubr.bf16.mxu1 %v735_v2 }
 0x1e3   : > { %971 = vmatmul.mubr.bf16.gmra.mrb[4].mxu1 %v734_v1 }
 0x2ae   : > { %v962_v5 = vpop.f32.mrb[0].mxu1 }
 0x2af   : > { %v981_v7 = vadd.f32 %v962_v5, %v724_v3  ;;  %v964_v8 = vpop.f32.mrb[1].mxu1 }
 0x2b0   : > { %v982_v10 = vadd.f32 %v964_v8, %v725_v4  ;;  %v966_v11 = vpop.f32.mrb[2].mxu1 }
 0x2b1   : > { %989 = vst [vmem:[#allocation3] sm:$0xff] %v981_v7  ;;  %v983_v12 = vadd.f32 %v966_v11, %v726_v6  ;;  %v968_v13 = vpop.f32.mrb[3].mxu1 }
 0x2b2   : > { %990 = vst [vmem:[#allocation3 + $0x8] sm:$0xff] %v982_v10  ;;  %v984_v14 = vadd.f32 %v968_v13, %v727_v9 }
 0x2b3   : > { %991 = vst [vmem:[#allocation3 + $0x10] sm:$0xff] %v983_v12 }
 0x2b4   : > { %992 = vst [vmem:[#allocation3 + $0x18] sm:$0xff] %v984_v14 }
 0x2b6   : > { %v972_v17 = vpop.f32.mrb[4].mxu1  ;;  %1000 = sbr.rel (%p1334_p2) target bundleno = 711 (0x2c7), region = 60 }
 0x2b7   : > { %v985_v19 = vadd.f32 %v972_v17, %v728_v15  ;;  %v974_v20 = vpop.f32.mrb[5].mxu1 }
 0x2b8   : > { %v986_v22 = vadd.f32 %v974_v20, %v729_v16  ;;  %v976_v23 = vpop.f32.mrb[6].mxu1  ;;  %v1001_v27 = vld [vmem:[#allocation3] sm:$0xff] (!%p1334_p2) }
 0x2b9   : > { %993 = vst [vmem:[#allocation3 + $0x20] sm:$0xff] %v985_v19  ;;  %v987_v24 = vadd.f32 %v976_v23, %v730_v18  ;;  %v978_v25 = vpop.f32.mrb[7].mxu1  ;;  %v1002_v29 = vld [vmem:[#allocation3 + $0x8] sm:$0xff] (!%p1334_p2)  ;;  %v1021_v41 = vadd.f32 (!%p1334_p2), %v1014_v30, %v1001_v27 }
 0x2ba   : > { %994 = vst [vmem:[#allocation3 + $0x28] sm:$0xff] %v986_v22  ;;  %v988_v26 = vadd.f32 %v978_v25, %v731_v21  ;;  %v1003_v32 = vld [vmem:[#allocation3 + $0x10] sm:$0xff] (!%p1334_p2)  ;;  %v1022_v42 = vadd.f32 (!%p1334_p2), %v1018_v31, %v1002_v29 }
 0x2bb   : > { %995 = vst [vmem:[#allocation3 + $0x30] sm:$0xff] %v987_v24  ;;  %v1004_v35 = vld [vmem:[#allocation3 + $0x18] sm:$0xff] (!%p1334_p2)  ;;  %v1023_v34 = vadd.f32 (!%p1334_p2), %v1014_v30, %v1003_v32  ;;  %1029 = vst [vmem:[%s2275_s6] sm:$0xff] (!%p1334_p2), %v1021_v41 }
 0x2bc   : > { %996 = vst [vmem:[#allocation3 + $0x38] sm:$0xff] %v988_v26  ;;  %v1024_v43 = vadd.f32 (!%p1334_p2), %v1018_v31, %v1004_v35  ;;  %1030 = vst [vmem:[%s2275_s6 + $0x8] sm:$0xff] (!%p1334_p2), %v1022_v42 }
 0x2bd   : > { %1031 = vst [vmem:[%s2275_s6 + $0x10] sm:$0xff] %v1023_v34 }
 0x2be   : > { %1032 = vst [vmem:[%s2275_s6 + $0x18] sm:$0xff] %v1024_v43 }
 0x2c0   : > { %v1005_v37 = vld [vmem:[#allocation3 + $0x20] sm:$0xff] }
 0x2c1   : > { %v1006_v38 = vld [vmem:[#allocation3 + $0x28] sm:$0xff]  ;;  %v1025_v33 = vadd.f32 %v1014_v30, %v1005_v37 }
 0x2c2   : > { %v1007_v39 = vld [vmem:[#allocation3 + $0x30] sm:$0xff]  ;;  %v1026_v44 = vadd.f32 %v1018_v31, %v1006_v38 }
 0x2c3   : > { %v1008_v40 = vld [vmem:[#allocation3 + $0x38] sm:$0xff]  ;;  %v1027_v36 = vadd.f32 %v1014_v30, %v1007_v39  ;;  %1033 = vst [vmem:[%s2275_s6 + $0x20] sm:$0xff] %v1025_v33 }
 0x2c4   : > { %v1028_v45 = vadd.f32 %v1018_v31, %v1008_v40  ;;  %1034 = vst [vmem:[%s2275_s6 + $0x28] sm:$0xff] %v1026_v44 }
 0x2c5   : > { %1035 = vst [vmem:[%s2275_s6 + $0x30] sm:$0xff] %v1027_v36 }
 0x2c6   : > { %1036 = vst [vmem:[%s2275_s6 + $0x38] sm:$0xff] %v1028_v45 }
 0x2c7 PF: > { %s2603_s29 = sld [smem:[#allocation20_spill]]  ;;  %s1059_s24 = sshll.u32 %s2273_s0, 4  ;;  %s2393_s24 = int_to_ptr.vmem [resolvable:$true] %s1059_s24 }
 0x2c8   : > { %s2604_s19 = sld [smem:[#allocation33_spill]]  ;;  %s2402_s30 = scalar_lea.sflag [#allocation6], %s378_s12 }
 0x2c9   : > { %s1689_s13 = scalar_lea.vmem %s2393_s24, 1024  ;;  %p2605_p9 = scmp.ne.s32.totalorder %s2579_s11, 0 }
 0x2ca   : > { %p1690_p12 = scmp.ne.s32.totalorder %s2393_s24, %s1689_s13 }
 0x2cc   : > { %p1691_p13 = pnand %p1690_p12, %p2605_p9 }
 0x2cd   : > { %s1351_s18 = sshll.u32 %s2603_s29, 4 }
 0x2ce   : > { %s1056_s1 = sadd.s32 %s1351_s18, %s2261_s9  ;;  %p1692_p4 = pneg %p1691_p13 }
 0x2cf   : > { %s1340_s15 = sshll.u32 %s1056_s1, 7  ;;  %s1881_s9 = smov [#allocation10]  }
 0x2d0   : > { %s2398_s17 = scalar_lea.hbm %s2604_s19, %s1340_s15  ;;  %s1693_s0 = sshll.u32 %s1881_s9, 4  ;;  %s1694_s0 = int_to_ptr.vmem [resolvable:$false] %s1693_s0 }
 0x2d1   : > { %s1695_s7 = scalar_lea.vmem %s1694_s0, 2048  ;;  %p1696_p1 = scmp.lt.s32.totalorder %s2393_s24, %s1694_s0 }
 0x2d2   : > { %p1697_p0 = scmp.lt.s32.totalorder %s1695_s7, %s1689_s13 }
 0x2d4   : > { %p1698_p5 = por %p1697_p0, %p1696_p1 }
 0x2d6   : > { %p1699_p7 = pnand %p1698_p5, %p1692_p4 }
 0x2d8   : > { %1702 = shalt.err (!%p1699_p7)
}
 0x2d9   : > { %s1703_s12 = scalar_lea.hbm %s2398_s17, 1024  ;;  %s1707_s1 = scalar_lea.hbm %s2604_s19, 4096 }
 0x2da   : > { %p1704_p8 = scmp.ne.s32.totalorder %s2398_s17, %s1703_s12  ;;  %p1708_p3 = scmp.lt.u32.totalorder %s2398_s17, %s2604_s19 }
 0x2db   : > { %p1709_p11 = scmp.lt.u32.totalorder %s1707_s1, %s1703_s12  ;;  %p1711_p12 = scmp.lt.u32.totalorder %s1703_s12, %s2398_s17 }
 0x2dc   : > { %p1705_p10 = pnand %p1704_p8, %p2605_p9 }
 0x2dd   : > { %p1710_p2 = por %p1709_p11, %p1708_p3 }
 0x2de   : > { %p1706_p6 = pneg %p1705_p10 }
 0x2df   : > { %p1712_p13 = por %p1711_p12, %p1710_p2 }
 0x2e1   : > { %p1713_p4 = pnand %p1712_p13, %p1706_p6 }
 0x2e3   : > { %1716 = shalt.err (!%p1713_p4)
}
 0x2e4   : > { %s1882_s2 = smov 256   ;;  %s1883_s13 = smov 512  }
 0x2e5   : > { %s1884_s9 = smov 16   ;;  %s1353_s0 = sshll.u32 %s2603_s29, 10 }
 0x2e6   : > { %1360 = dma.vmem_to_hbm [thread:$0]  (%p2605_p9), %s2393_s24, 1024, %s2398_s17, %s2402_s30, %s1882_s2, %s1883_s13, %s1884_s9  }
 0x2e7   : > { %s2606_s26 = sld [smem:[#allocation34_spill]]  ;;  %s1076_s15 = sshll.u32 %s2275_s6, 4  ;;  %s2435_s15 = int_to_ptr.vmem [resolvable:$true] %s1076_s15 }
 0x2e8   : > { %s1043_s14 = scalar_lea.sflag [#allocation12], %s2239_s16  ;;  %s1717_s3 = scalar_lea.vmem %s2435_s15, 1024 }
 0x2e9   : > { %p1718_p1 = scmp.ne.s32.totalorder %s2435_s15, %s1717_s3  ;;  %p2608_p0 = scmp.ne.s32.totalorder %s2580_s4, 0 }
 0x2ea   : > { %s1885_s11 = smov [#allocation11]  }
 0x2eb   : > { %p1719_p5 = pnand %p1718_p1, %p2608_p0  ;;  %s1721_s24 = sshll.u32 %s1885_s11, 4  ;;  %s1722_s24 = int_to_ptr.vmem [resolvable:$false] %s1721_s24 }
 0x2ec   : > { %s1723_s29 = scalar_lea.vmem %s1722_s24, 2048  ;;  %p1724_p9 = scmp.lt.s32.totalorder %s2435_s15, %s1722_s24 }
 0x2ed   : > { %s2607_s18 = smov %s2606_s26  ;;  %s2432_s1 = scalar_lea.hbm %s2606_s26, %s1353_s0 }
 0x2ee   : > { %p1720_p7 = pneg %p1719_p5  ;;  %p1725_p8 = scmp.lt.s32.totalorder %s1723_s29, %s1717_s3 }
 0x2f0   : > { %p1726_p10 = por %p1725_p8, %p1724_p9 }
 0x2f2   : > { %p1727_p6 = pnand %p1726_p10, %p1720_p7 }
 0x2f4   : > { %1730 = shalt.err (!%p1727_p6)
}
 0x2f5   : > { %s1731_s6 = scalar_lea.hbm %s2432_s1, 1024  ;;  %s1735_s13 = scalar_lea.hbm %s2607_s18, 2048 }
 0x2f6   : > { %p1732_p3 = scmp.ne.s32.totalorder %s2432_s1, %s1731_s6  ;;  %p1736_p12 = scmp.lt.u32.totalorder %s2432_s1, %s2607_s18 }
 0x2f7   : > { %p1737_p13 = scmp.lt.u32.totalorder %s1735_s13, %s1731_s6  ;;  %p1739_p1 = scmp.lt.u32.totalorder %s1731_s6, %s2432_s1 }
 0x2f8   : > { %p1733_p11 = pnand %p1732_p3, %p2608_p0 }
 0x2f9   : > { %p1738_p4 = por %p1737_p13, %p1736_p12 }
 0x2fa   : > { %p1734_p2 = pneg %p1733_p11 }
 0x2fb   : > { %p1740_p5 = por %p1739_p1, %p1738_p4 }
 0x2fd   : > { %p1741_p7 = pnand %p1740_p5, %p1734_p2 }
 0x2ff   : > { %1744 = shalt.err (!%p1741_p7)
}
 0x300   : > { %1361 = dma.vmem_to_hbm [thread:$0]  (%p2608_p0), %s2435_s15, 1024, %s2432_s1, %s1043_s14, %s1882_s2, %s1882_s2, %s1884_s9  }
 0x301 PF: > { %p1382_p9 = scmp.ge.s32.totalorder %s1871_s10, 2  ;;  %s1091_s3 = sand.u32 1, %s1819_s21  }
 0x302   : > { %p2609_p8 = scmp.ne.s32.totalorder %s2581_s5, 0  ;;  %s1092_s12 = scalar_lea.sflag [#allocation6], %s1091_s3 }
 0x304   : > { %p1375_p10 = pnand %p1382_p9, %p2609_p8 }
 0x306   : > { %1810 = dma.done.wait (!%p1375_p10), %s1092_s12, 1024  }
 0x307   : > { %1812 = vsyncadd (!%p1375_p10), %s1092_s12, 4294966272  ;;  %s1100_s4 = sand.u32 1, %s1843_s27   ;;  %p2610_p6 = scmp.ne.s32.totalorder %s2583_s20, 0 }
 0x308   : > { %s1101_s16 = scalar_lea.sflag [#allocation12], %s1100_s4 }
 0x309   : > { %p1378_p3 = pnand %p1382_p9, %p2610_p6 }
 0x30b   : > { %1814 = dma.done.wait (!%p1378_p3), %s1101_s16, 1024  }
 0x30c   : > { %1816 = vsyncadd (!%p1378_p3), %s1101_s16, 4294966272  ;;  %s29_s10 = sadd.s32 1, %s1871_s10   ;;  %s2612_s5 = sld [smem:[#allocation27_spill]] }
 0x30d   : > { %p2472_p0 = scmp.ge.s32.totalorder %s29_s10, 6   ;;  %s2613_s9 = sld [smem:[#allocation17_spill]] }
 0x30e   : > { %s2614_s26 = sld [smem:[#allocation25_spill]]  ;;  %s2615_s1 = sld [smem:[#allocation18_spill]] }
 0x30f   : > { %s2616_s29 = sld [smem:[#allocation26_spill]]  ;;  %s2617_s7 = sld [smem:[#allocation21_spill]] }
 0x310   : > { %s2618_s20 = sld [smem:[#allocation22_spill]]  ;;  %s2619_s15 = sld [smem:[#allocation23_spill]] }
 0x311   : > { %s2620_s21 = smov %s1823_s22  ;;  %s2621_s22 = smov %s1827_s23 }
 0x312   : > { %s2622_s23 = smov %s2612_s5  ;;  %s2623_s24 = smov %s1835_s25 }
 0x313   : > { %s2624_s25 = smov %s2613_s9  ;;  %s2625_s27 = smov %s1847_s28 }
 0x314   : > { %s2626_s28 = smov %s2615_s1  ;;  %s2627_s30 = smov %s1863_s8 }
 0x315   :  { %28 = sbr.rel (!%p2472_p0) target bundleno = 22 (0x16), region = 137 }
 0x316   : > { %s2628_s8 = smov %s2618_s20  ;;  %s2629_s9 = smov %s2619_s15 }
 0x31c   :  { %1106 = vsyncpa [#allocation5], 1 }
 0x31d   :  { %1108 = vsyncpa [#allocation5 + $0x1], 1 }
 0x31e   :  { %1109 = vsyncpa [#allocation8], 1 }
 0x31f   :  { %1111 = vsyncpa [#allocation8 + $0x1], 1 }
 0x320   :  { %1112 = vsyncpa [#allocation6], 1 }
 0x321   :  { %1114 = vsyncpa [#allocation6 + $0x1], 1 }
 0x322   :  { %1115 = vsyncpa [#allocation12], 1 }
 0x323   :  { %1117 = vsyncpa [#allocation12 + $0x1], 1 }

</bundles_post_ra>
